<compile_context>
chip_gen: v5e
topology: v5e:2x2
jax: 0.10.0
libtpu: 0.0.40
codegen_flags: <defaults>
</compile_context>

<pallas_src>
import functools

import jax
import jax.numpy as jnp
from jax.experimental import pallas as pl
from jax.experimental.pallas import tpu as pltpu

_LANE = 128


def _round_up(x, m):
    return ((x + m - 1) // m) * m


# ----------------------------------------------------------------------------
# Kernel
# ----------------------------------------------------------------------------
def attention_kernel(hidden_ref, enc_ref, wh_ref, we_ref, b_ref, v_ref, out_ref,
                     *, approx_recip: bool, epilogue_dtype):
    # hidden_ref: [TB, Din]
    # enc_ref:    [S, TB, E2]   (native seq-first layout; no HBM transpose)
    # wh_ref:     [Din, Dp]     (attn weight slice for `hidden`, transposed, D padded)
    # we_ref:     [E2,  Dp]     (attn weight slice for encoder outs, transposed)
    # b_ref:      [1, Dp]       (f32)
    # v_ref:      [1, Dp]       (f32)
    # out_ref:    [TB, S]
    h = hidden_ref[...]                       # [TB, Din]
    enc = enc_ref[...]                        # [S, TB, E2]
    S, TB, E2 = enc.shape

    # hidden projection (shared across src positions), f32 MXU accumulation,
    # with the bias folded in once -> only one VPU add over the big tensor.
    h_proj = jnp.dot(h, wh_ref[...], preferred_element_type=jnp.float32)   # [TB, Dp]
    hb = h_proj + b_ref[...].astype(jnp.float32)                           # [TB, Dp]

    # encoder projection: one MXU matmul over all S*TB rows.  The flatten is
    # layout-preserving because TB is rounded to the dtype's sublane tile
    # (8 f32 / 16 bf16); when TB == B < tile the relayout copy is tiny.
    e_proj = jnp.dot(enc.reshape(S * TB, E2), we_ref[...],
                     preferred_element_type=jnp.float32).reshape(S, TB, -1)

    # tanh epilogue: bf16 on v6e/v7x bf16 fast path, f32 otherwise.
    energy = jnp.tanh((e_proj + hb[None, :, :]).astype(epilogue_dtype))    # [S,TB,Dp]

    # v-reduction in f32 (VPU mul + XLU lane reduce; padded columns are exact 0).
    vvec = v_ref[...].astype(jnp.float32)                                  # [1, Dp]
    scores = jnp.sum(energy.astype(jnp.float32) * vvec[None, :, :], axis=-1)  # [S, TB]

    # Transpose only the tiny score tile, then softmax over src_len (lane axis).
    scores = scores.T                                                      # [TB, S]
    m = jnp.max(scores, axis=-1, keepdims=True)
    e = jnp.exp(scores - m)
    denom = jnp.sum(e, axis=-1, keepdims=True)
    out_ref[...] = (e * pl.reciprocal(denom, approx=approx_recip)).astype(out_ref.dtype)


# ----------------------------------------------------------------------------
# Hoisted weight prep (do once, not per decoder step)
# ----------------------------------------------------------------------------
def prepare_attention_params(attn_w, attn_b, v, compute_dtype=jnp.float32):
    """attn_w: [Ddec, Ddec + 2*Denc]; concat order in forward() is (hidden, enc),
    so columns [:Ddec] multiply `hidden`, columns [Ddec:] multiply encoder outs.
    The output dim Ddec is zero-padded to a multiple of 128 (lane-dense
    intermediates); padded columns contribute exactly 0 to the scores."""
    D = attn_b.shape[0]
    Dp = _round_up(D, _LANE)
    pad = Dp - D

    wh_t = jnp.asarray(attn_w[:, :D].T, dtype=compute_dtype)    # [D, D]
    we_t = jnp.asarray(attn_w[:, D:].T, dtype=compute_dtype)    # [E2, D]
    b1 = jnp.asarray(attn_b, dtype=jnp.float32)
    v1 = jnp.asarray(v, dtype=jnp.float32)
    if pad:
        wh_t = jnp.pad(wh_t, ((0, 0), (0, pad)))
        we_t = jnp.pad(we_t, ((0, 0), (0, pad)))
        b1 = jnp.pad(b1, (0, pad))
        v1 = jnp.pad(v1, (0, pad))
    return wh_t, we_t, b1.reshape(1, Dp), v1.reshape(1, Dp)


# ----------------------------------------------------------------------------
# Generation-aware sizing
# ----------------------------------------------------------------------------
def _tpu_generation():
    kind = ""
    try:
        kind = jax.devices()[0].device_kind.lower()
    except Exception:
        pass
    for g in (7, 6, 5, 4):
        if ("v%d" % g) in kind:
            return g
    return 6  # conservative default


def _vmem_capacity_bytes(gen):
    try:
        cap = int(pltpu.get_tpu_info().vmem_capacity_bytes)
        if cap > 0:
            return cap
    except Exception:
        pass
    return (64 if gen >= 7 else 128) * 1024 * 1024


def _pick_batch_tile(B, S, E2, D_in, D_pad, in_itemsize, epi_itemsize,
                     budget_bytes, min_steps):
    """Largest batch tile whose per-step working set fits the VMEM budget,
    rounded to the dtype's sublane tile, capped so the grid has >= min_steps."""
    sublane = 8 * max(1, 4 // in_itemsize)        # 8 f32 / 16 bf16 / 32 int8
    # Fixed VMEM residents: weights + bias + v (constant index_maps; account
    # double-buffering conservatively) — subtracted from the budget, not folded
    # into per_row.
    fixed = 2 * (D_in + E2 + 2) * D_pad * in_itemsize
    avail = max(budget_bytes - fixed, budget_bytes // 8)
    per_row = (2 * S * E2 * in_itemsize           # enc tile, double buffered
               + S * D_pad * 4                    # e_proj (f32)
               + S * D_pad * epi_itemsize         # energy (epilogue dtype)
               + 8 * S * 4                        # scores / exp / output (dbl buf)
               + 2 * D_in * in_itemsize           # hidden tile (dbl buf)
               + 2 * D_pad * 4)                   # h_proj / hb
    tb = int(avail // max(per_row, 1))
    tb = min(tb, -(-B // min_steps))              # keep >= min_steps grid steps
    if tb >= B:
        return B
    if tb <= sublane:
        return min(sublane, B)
    return (tb // sublane) * sublane


# ----------------------------------------------------------------------------
# Wrapper
# ----------------------------------------------------------------------------
def attention_forward(hidden, encoder_outputs, params, *,
                      batch_tile=None, approx_recip=True,
                      epilogue_dtype=None, vmem_limit_bytes=None):
    """hidden: [B, Ddec]; encoder_outputs: [S, B, 2*Denc] (native PyTorch layout)."""
    wh_t, we_t, b2d, v2d = params
    S, B, E2 = encoder_outputs.shape
    D_in = hidden.shape[-1]
    D_pad = wh_t.shape[-1]

    gen = _tpu_generation()
    vmem_cap = _vmem_capacity_bytes(gen)
    in_itemsize = jnp.dtype(encoder_outputs.dtype).itemsize

    if epilogue_dtype is None:
        # bf16 tanh epilogue only on the bf16 fast path and only on chips with a
        # bf16 VPU/EUP (v6e / v7x); v5e and the strict f32 path stay f32.
        if gen >= 6 and jnp.dtype(encoder_outputs.dtype) == jnp.dtype(jnp.bfloat16):
            epilogue_dtype = jnp.bfloat16
        else:
            epilogue_dtype = jnp.float32
    epi_itemsize = jnp.dtype(epilogue_dtype).itemsize

    if vmem_limit_bytes is None:
        vmem_limit_bytes = (vmem_cap * 3) // 4    # ~96 MiB v5e/v6e, ~48 MiB v7x

    if batch_tile is None:
        budget = int(vmem_cap * 0.35)             # ~45 MiB v5e/v6e, ~22 MiB v7x
        min_steps = 4 if gen >= 7 else 2          # keep both v7x TCs busy / overlap DMA
        batch_tile = _pick_batch_tile(B, S, E2, D_in, D_pad, in_itemsize,
                                      epi_itemsize, budget, min_steps)
    TB = batch_tile
    grid = (pl.cdiv(B, TB),)

    kernel = functools.partial(attention_kernel, approx_recip=approx_recip,
                               epilogue_dtype=epilogue_dtype)

    return pl.pallas_call(
        kernel,
        out_shape=jax.ShapeDtypeStruct((B, S), jnp.float32),
        grid_spec=pltpu.PrefetchScalarGridSpec(
            num_scalar_prefetch=0,
            grid=grid,
            in_specs=[
                pl.BlockSpec((TB, D_in), lambda b: (b, 0)),        # hidden tile
                pl.BlockSpec((S, TB, E2), lambda b: (0, b, 0)),    # enc tile, native [S,B,E2]
                pl.BlockSpec((D_in, D_pad), lambda b: (0, 0)),     # Wh^T  (VMEM-resident)
                pl.BlockSpec((E2, D_pad), lambda b: (0, 0)),       # We^T  (VMEM-resident)
                pl.BlockSpec((1, D_pad), lambda b: (0, 0)),        # bias  (VMEM-resident)
                pl.BlockSpec((1, D_pad), lambda b: (0, 0)),        # v     (VMEM-resident)
            ],
            out_specs=pl.BlockSpec((TB, S), lambda b: (b, 0)),     # [B, S]
        ),
        compiler_params=pltpu.CompilerParams(
            dimension_semantics=("parallel",),   # shard batch tiles across v7x's 2 TCs
            vmem_limit_bytes=int(vmem_limit_bytes),
        ),
    )(hidden, encoder_outputs, wh_t, we_t, b2d, v2d)


# ----------------------------------------------------------------------------
# Pure-JAX reference
# ----------------------------------------------------------------------------
def attention_reference(hidden, encoder_outputs, attn_w, attn_b, v):
    S, B, _ = encoder_outputs.shape
    h_rep = jnp.repeat(hidden[:, None, :], S, axis=1)            # [B, S, Ddec]
    enc = jnp.transpose(encoder_outputs, (1, 0, 2))              # [B, S, E2]
    cat = jnp.concatenate([h_rep, enc], axis=2)
    energy = jnp.tanh(cat @ attn_w.T + attn_b)                   # [B, S, Ddec]
    scores = jnp.einsum('bsd,d->bs', energy, v)
    return jax.nn.softmax(scores, axis=1)


if __name__ == "__main__":
    # Small deterministic shapes consistent with the module's forward.
    enc_hid_dim = 16
    dec_hid_dim = 32
    batch = 2
    src_len = 8

    key = jax.random.PRNGKey(0)
    k1, k2, k3, k4, k5 = jax.random.split(key, 5)

    # Deterministic synthetic "parameters" (matches __init__ shapes).
    attn_w = jax.random.uniform(k1, (dec_hid_dim, enc_hid_dim * 2 + dec_hid_dim),
                                jnp.float32, -0.1, 0.1)
    attn_b = jax.random.uniform(k2, (dec_hid_dim,), jnp.float32, -0.1, 0.1)
    v = jax.random.uniform(k3, (dec_hid_dim,), jnp.float32)      # torch.rand -> U[0,1)

    # Inputs (native PyTorch layouts).
    hidden = jax.random.normal(k4, (batch, dec_hid_dim), jnp.float32)
    encoder_outputs = jax.random.normal(k5, (src_len, batch, enc_hid_dim * 2),
                                        jnp.float32)

    ref = attention_reference(hidden, encoder_outputs, attn_w, attn_b, v)

    # --- strict-precision path: f32 MXU operands, f32 epilogue, exact recip ----
    params_f32 = prepare_attention_params(attn_w, attn_b, v, jnp.float32)
    out = attention_forward(hidden, encoder_outputs, params_f32, approx_recip=False)
    out = jax.block_until_ready(out)
    assert out.shape == (batch, src_len)
    assert jnp.allclose(out, ref, atol=1e-5, rtol=1e-5), "f32 path mismatch vs reference"
    assert jnp.allclose(jnp.sum(out, axis=1), 1.0, atol=1e-5)

    # --- fast path: bf16 MXU operands (f32 accumulation), bf16 tanh epilogue on
    #     v6e/v7x, approx EUP reciprocal -----------------------------------------
    params_bf16 = prepare_attention_params(attn_w, attn_b, v, jnp.bfloat16)
    out_fast = attention_forward(hidden.astype(jnp.bfloat16),
                                 encoder_outputs.astype(jnp.bfloat16),
                                 params_bf16, approx_recip=True)
    out_fast = jax.block_until_ready(out_fast)
    assert out_fast.shape == (batch, src_len)
    assert jnp.allclose(out_fast, ref, atol=2e-2, rtol=2e-2), "bf16 path mismatch vs reference"
    assert jnp.allclose(jnp.sum(out_fast, axis=1), 1.0, atol=1e-2)

    print("KERNEL_OK")
</pallas_src>

<mosaic_0001>
module attributes {stable_mosaic.version = 11 : i64} {
  func.func @attention_kernel(%arg0: i32, %arg1: memref<2x32xf32, #tpu.memory_space<vmem>>, %arg2: memref<8x2x32xf32, #tpu.memory_space<vmem>>, %arg3: memref<32x128xf32, #tpu.memory_space<vmem>>, %arg4: memref<32x128xf32, #tpu.memory_space<vmem>>, %arg5: memref<1x128xf32, #tpu.memory_space<vmem>>, %arg6: memref<1x128xf32, #tpu.memory_space<vmem>>, %arg7: memref<2x8xf32, #tpu.memory_space<vmem>>) attributes {dimension_semantics = [#tpu.dimension_semantics<parallel>], iteration_bounds = array<i64: 1>, scalar_prefetch = 0 : i64, scratch_operands = 0 : i64, tpu.core_type = #tpu.core_type<tc>, window_params = [{transform_indices = @transform_0, window_bounds = array<i64: 2, 32>}, {transform_indices = @transform_1, window_bounds = array<i64: 8, 2, 32>}, {pipeline_mode = #tpu.pipeline_mode<synchronous>, transform_indices = @transform_2, window_bounds = array<i64: 32, 128>}, {pipeline_mode = #tpu.pipeline_mode<synchronous>, transform_indices = @transform_3, window_bounds = array<i64: 32, 128>}, {pipeline_mode = #tpu.pipeline_mode<synchronous>, transform_indices = @transform_4, window_bounds = array<i64: 1, 128>}, {pipeline_mode = #tpu.pipeline_mode<synchronous>, transform_indices = @transform_5, window_bounds = array<i64: 1, 128>}, {transform_indices = @transform_6, window_bounds = array<i64: 2, 8>}]} {
    %c0 = arith.constant 0 : index
    %c0_0 = arith.constant 0 : index
    %0 = vector.load %arg1[%c0, %c0_0] : memref<2x32xf32, #tpu.memory_space<vmem>>, vector<2x32xf32>
    %c0_1 = arith.constant 0 : index
    %c0_2 = arith.constant 0 : index
    %c0_3 = arith.constant 0 : index
    %1 = vector.load %arg2[%c0_1, %c0_2, %c0_3] : memref<8x2x32xf32, #tpu.memory_space<vmem>>, vector<8x2x32xf32>
    %c0_4 = arith.constant 0 : index
    %c0_5 = arith.constant 0 : index
    %2 = vector.load %arg3[%c0_4, %c0_5] : memref<32x128xf32, #tpu.memory_space<vmem>>, vector<32x128xf32>
    %cst = arith.constant dense<0.000000e+00> : vector<2x128xf32>
    %3 = tpu.matmul %0, %2, %cst {dimension_numbers = #tpu.dot_dimension_numbers<[1], [0], [0], [1], [0, 0, 1, 1], [], []>} : vector<2x32xf32>, vector<32x128xf32>, vector<2x128xf32> -> vector<2x128xf32>
    %c0_6 = arith.constant 0 : index
    %c0_7 = arith.constant 0 : index
    %4 = vector.load %arg5[%c0_6, %c0_7] : memref<1x128xf32, #tpu.memory_space<vmem>>, vector<1x128xf32>
    %5 = vector.broadcast %4 : vector<1x128xf32> to vector<2x128xf32>
    %6 = arith.addf %3, %5 : vector<2x128xf32>
    %7 = vector.shape_cast %1 : vector<8x2x32xf32> to vector<16x32xf32>
    %c0_8 = arith.constant 0 : index
    %c0_9 = arith.constant 0 : index
    %8 = vector.load %arg4[%c0_8, %c0_9] : memref<32x128xf32, #tpu.memory_space<vmem>>, vector<32x128xf32>
    %cst_10 = arith.constant dense<0.000000e+00> : vector<16x128xf32>
    %9 = tpu.matmul %7, %8, %cst_10 {dimension_numbers = #tpu.dot_dimension_numbers<[1], [0], [0], [1], [0, 0, 1, 1], [], []>} : vector<16x32xf32>, vector<32x128xf32>, vector<16x128xf32> -> vector<16x128xf32>
    %10 = vector.shape_cast %9 : vector<16x128xf32> to vector<8x2x128xf32>
    %11 = vector.shape_cast %6 : vector<2x128xf32> to vector<1x2x128xf32>
    %12 = vector.broadcast %11 : vector<1x2x128xf32> to vector<8x2x128xf32>
    %13 = arith.addf %10, %12 : vector<8x2x128xf32>
    %14 = math.tanh %13 : vector<8x2x128xf32>
    %c0_11 = arith.constant 0 : index
    %c0_12 = arith.constant 0 : index
    %15 = vector.load %arg6[%c0_11, %c0_12] : memref<1x128xf32, #tpu.memory_space<vmem>>, vector<1x128xf32>
    %16 = vector.shape_cast %15 : vector<1x128xf32> to vector<1x1x128xf32>
    %17 = vector.broadcast %16 : vector<1x1x128xf32> to vector<8x2x128xf32>
    %18 = arith.mulf %14, %17 : vector<8x2x128xf32>
    %cst_13 = arith.constant dense<0.000000e+00> : vector<8x2xf32>
    %19 = vector.multi_reduction <add>, %18, %cst_13 [2] : vector<8x2x128xf32> to vector<8x2xf32>
    %20 = tpu.transpose %19, [1, 0] : vector<8x2xf32> -> vector<2x8xf32>
    %cst_14 = arith.constant dense<0xFF800000> : vector<2xf32>
    %21 = vector.multi_reduction <maximumf>, %20, %cst_14 [1] : vector<2x8xf32> to vector<2xf32>
    %22 = vector.shape_cast %21 : vector<2xf32> to vector<2x1xf32>
    %23 = vector.broadcast %22 : vector<2x1xf32> to vector<2x8xf32>
    %24 = arith.subf %20, %23 : vector<2x8xf32>
    %25 = math.exp %24 : vector<2x8xf32>
    %cst_15 = arith.constant dense<0.000000e+00> : vector<2xf32>
    %26 = vector.multi_reduction <add>, %25, %cst_15 [1] : vector<2x8xf32> to vector<2xf32>
    %27 = vector.shape_cast %26 : vector<2xf32> to vector<2x1xf32>
    %28 = tpu.reciprocal %27 : vector<2x1xf32> -> vector<2x1xf32>
    %29 = vector.broadcast %28 : vector<2x1xf32> to vector<2x8xf32>
    %30 = arith.mulf %25, %29 : vector<2x8xf32>
    %c0_16 = arith.constant 0 : index
    %c0_17 = arith.constant 0 : index
    %31 = vector.load %arg7[%c0_16, %c0_17] : memref<2x8xf32, #tpu.memory_space<vmem>>, vector<2x8xf32>
    tpu.vector_store %arg7[%c0_16, %c0_17], %30 {strides = array<i32>} : memref<2x8xf32, #tpu.memory_space<vmem>>, vector<2x8xf32>,
    return
  }
  func.func @transform_0(%arg0: i32) -> (i32, i32) {
    %c0_i32 = arith.constant 0 : i32
    %c0_i32_0 = arith.constant 0 : i32
    return %arg0, %c0_i32 : i32, i32
  }
  func.func @transform_1(%arg0: i32) -> (i32, i32, i32) {
    %c0_i32 = arith.constant 0 : i32
    %c0_i32_0 = arith.constant 0 : i32
    %c0_i32_1 = arith.constant 0 : i32
    return %c0_i32, %arg0, %c0_i32_0 : i32, i32, i32
  }
  func.func @transform_2(%arg0: i32) -> (i32, i32) {
    %c0_i32 = arith.constant 0 : i32
    %c0_i32_0 = arith.constant 0 : i32
    %c0_i32_1 = arith.constant 0 : i32
    return %c0_i32, %c0_i32_0 : i32, i32
  }
  func.func @transform_3(%arg0: i32) -> (i32, i32) {
    %c0_i32 = arith.constant 0 : i32
    %c0_i32_0 = arith.constant 0 : i32
    %c0_i32_1 = arith.constant 0 : i32
    return %c0_i32, %c0_i32_0 : i32, i32
  }
  func.func @transform_4(%arg0: i32) -> (i32, i32) {
    %c0_i32 = arith.constant 0 : i32
    %c0_i32_0 = arith.constant 0 : i32
    %c0_i32_1 = arith.constant 0 : i32
    return %c0_i32, %c0_i32_0 : i32, i32
  }
  func.func @transform_5(%arg0: i32) -> (i32, i32) {
    %c0_i32 = arith.constant 0 : i32
    %c0_i32_0 = arith.constant 0 : i32
    %c0_i32_1 = arith.constant 0 : i32
    return %c0_i32, %c0_i32_0 : i32, i32
  }
  func.func @transform_6(%arg0: i32) -> (i32, i32) {
    %c0_i32 = arith.constant 0 : i32
    %c0_i32_0 = arith.constant 0 : i32
    return %arg0, %c0_i32 : i32, i32
  }
}

</mosaic_0001>

<bundles_post_ra>
// kernel: tpu_custom_call.1
= control target key start
LH: loop header
LB: loop body
LE: loop exit
PB: predicated region body
PF: predicated region fallthrough
CT: control target
= control target key end

     0   :  { %11 = vsyncpa [#allocation3], 0  ;;  %s605_s0 = inlined_call_operand.hbm [shape: f32[2,32], index: 0, kind: input, shape index: {}]   ;;  %s606_s1 = inlined_call_operand.hbm [shape: f32[8,2,32], index: 1, kind: input, shape index: {}]   ;;  %s607_s2 = inlined_call_operand.hbm [shape: f32[32,128], index: 2, kind: input, shape index: {}]   ;;  %s608_s3 = inlined_call_operand.hbm [shape: f32[32,128], index: 3, kind: input, shape index: {}]   ;;  %s609_s4 = inlined_call_operand.vmem [shape: f32[1,128], index: 4, kind: input, shape index: {}]   ;;  %s610_s5 = inlined_call_operand.vmem [shape: f32[1,128], index: 5, kind: input, shape index: {}]   ;;  %s611_s6 = inlined_call_operand.hbm [shape: f32[2,8], index: 6, kind: output, shape index: {}]  }
   0x1   :  { %12 = vsyncpa [#allocation6], 0 }
   0x2   :  { %13 = vsyncpa [#allocation9], 0  ;;  %s30_s23 = sshll.u32 %s606_s1, 4  ;;  %s31_s23 = int_to_ptr.hbm [resolvable:$true] %s30_s23 }
   0x3   :  { %14 = vsyncpa [#allocation4], 0  ;;  %s526_s24 = smov [#allocation5]   ;;  %s20_s28 = sshll.u32 %s605_s0, 4  ;;  %s21_s28 = int_to_ptr.hbm [resolvable:$true] %s20_s28 }
   0x4   :  { %s32_s25 = sshll.u32 %s526_s24, 4  ;;  %s527_s29 = smov 32   ;;  %s33_s25 = int_to_ptr.vmem [resolvable:$true] %s32_s25 }
   0x5   :  { %s528_s30 = smov 2   ;;  %s529_s7 = smov [#allocation2]  }
   0x6   :  { %38 = dma.hbm_to_vmem [thread:$0]  %s31_s23, 256, %s33_s25, [#allocation6], %s527_s29, %s527_s29, %s528_s30  }
   0x7   :  { %s22_s8 = sshll.u32 %s529_s7, 4  ;;  %s43_s11 = sshll.u32 %s607_s2, 4  ;;  %s23_s8 = int_to_ptr.vmem [resolvable:$true] %s22_s8  ;;  %s44_s11 = int_to_ptr.hbm [resolvable:$true] %s43_s11 }
   0x8   :  { %25 = dma.hbm_to_vmem [thread:$0]  %s21_s28, 32, %s23_s8, [#allocation3]  }
   0x9   :  { %s530_s1 = smov [#allocation7]   ;;  %s56_s0 = sshll.u32 %s608_s3, 4  ;;  %s57_s0 = int_to_ptr.hbm [resolvable:$true] %s56_s0 }
   0xa   :  { %s45_s12 = sshll.u32 %s530_s1, 4  ;;  %s531_s15 = smov 128   ;;  %s46_s12 = int_to_ptr.vmem [resolvable:$true] %s45_s12 }
   0xb   :  { %s532_s16 = smov 8   ;;  %s533_s17 = smov [#allocation8]  }
   0xc   :  { %51 = dma.hbm_to_vmem [thread:$0]  %s44_s11, 512, %s46_s12, [#allocation6], %s531_s15, %s531_s15, %s532_s16  }
   0xd   :  { %s58_s18 = sshll.u32 %s533_s17, 4  ;;  %s59_s18 = int_to_ptr.vmem [resolvable:$true] %s58_s18 }
   0xe   :  { %64 = dma.hbm_to_vmem [thread:$0]  %s57_s0, 512, %s59_s18, [#allocation9], %s531_s15, %s531_s15, %s532_s16  }
   0xf   :  { %518 = dma.done.wait [#allocation3], 32  }
  0x10   :  { %519 = vsyncadd [#allocation3], 4294967264 }
  0x11   :  { %520 = dma.done.wait [#allocation6], 768  }
  0x12   :  { %521 = vsyncadd [#allocation6], 4294966528 }
  0x13   :  { %522 = dma.done.wait [#allocation9], 512  }
  0x14   :  { %523 = vsyncadd [#allocation9], 4294966784  ;;  %v97_v0 = vld [vmem:[#allocation7 + $0x18] sm:$0xff]  ;;  %v96_v2 = vld [vmem:[#allocation7 + $0x10] sm:$0xff]  ;;  %vm102_vm0 = vcmask 261120   ;;  %vm224_vm1 = vcmask 1041408  }
  0x15   :  { %v129_v1 = vld [vmem:[#allocation8 + $0x18] sm:$0xff]  ;;  %118 = vmatpush.msra.mxu0 %v97_v0  ;;  %v128_v3 = vld [vmem:[#allocation8 + $0x10] sm:$0xff]  ;;  %v95_v4 = vld [vmem:[#allocation7 + $0x8] sm:$0xff]  ;;  %v257_v0 = vlaneseq  ;;  %vm267_vm2 = vcmask 1041409   ;;  %vm269_vm3 = vcmask 1042434   ;;  %vm271_vm4 = vcmask 1043459  }
  0x16   :  { %171 = vmatpush.msra.mxu1 %v129_v1  ;;  %362 = vmatpush.msra.mxu2 %v129_v1  ;;  %v127_v5 = vld [vmem:[#allocation8 + $0x8] sm:$0xff]  ;;  %v86_v6 = vld [vmem:[#allocation5] sm:$0x3]  ;;  %v87_v7 = vld [vmem:[#allocation5 + $0x2] sm:$0x3]  ;;  %vm273_vm5 = vcmask 1044484  }
  0x17   :  { %119 = vmatpush.msra.mxu0 %v96_v2  ;;  %v88_v8 = vld [vmem:[#allocation5 + $0x4] sm:$0x3]  ;;  %v94_v9 = vld [vmem:[#allocation7] sm:$0xff]  ;;  %v89_v11 = vld [vmem:[#allocation5 + $0x6] sm:$0x3]  ;;  %v258_v2 = vand.u32 127, %v257_v0 }
  0x18   :  { %172 = vmatpush.msra.mxu1 %v128_v3  ;;  %363 = vmatpush.msra.mxu2 %v128_v3  ;;  %v126_v10 = vld [vmem:[#allocation8] sm:$0xff]  ;;  %138 = vst [vmem:[#allocation1] ss:$4 sm:$0xff] %v86_v6  ;;  %v85_v12 = vld [vmem:[#allocation2] sm:$0x3]  ;;  %vm275_vm6 = vcmask 1045509  }
  0x19   :  { %120 = vmatpush.msra.mxu0 %v95_v4  ;;  %140 = vst [vmem:[#allocation1 + $0x1] ss:$4 sm:$0xff] %v87_v7  ;;  %v90_v13 = vld [vmem:[#allocation5 + $0x8] sm:$0x3]  ;;  %v91_v14 = vld [vmem:[#allocation5 + $0xa] sm:$0x3] }
  0x1a   :  { %173 = vmatpush.msra.mxu1 %v127_v5  ;;  %364 = vmatpush.msra.mxu2 %v127_v5  ;;  %142 = vst [vmem:[#allocation1 + $0x2] ss:$4 sm:$0xff] %v88_v8  ;;  %v92_v15 = vld [vmem:[#allocation5 + $0xc] sm:$0x3]  ;;  %v93_v16 = vld [vmem:[#allocation5 + $0xe] sm:$0x3] }
  0x1b   :  { %121 = vmatpush.msra.mxu0 %v94_v9  ;;  %144 = vst [vmem:[#allocation1 + $0x3] ss:$4 sm:$0xff] %v89_v11  ;;  %v376_v19 = vld [vmem:[%s609_s4] ss:$0 sm:$0xff]  ;;  %vm277_vm7 = vcmask 1046534   ;;  %vm279_vm8 = vcmask 1047559  }
  0x1c   :  { %174 = vmatpush.msra.mxu1 %v126_v10  ;;  %359 = vmatmul.msk.f32.vlgmr.msra.gmra.mxu0 %vm102_vm0, %v85_v12  ;;  %146 = vst [vmem:[#allocation1 + $0x20] ss:$4 sm:$0xff] %v90_v13  ;;  %v377_v30 = vld [vmem:[%s610_s5] ss:$0 sm:$0xff]  ;;  %vm314_vm9 = vcmask 58368   ;;  %s534_s4 = smov [#allocation10]  }
  0x1d   :  { %365 = vmatpush.msra.mxu2 %v126_v10  ;;  %148 = vst [vmem:[#allocation1 + $0x21] ss:$4 sm:$0xff] %v91_v14  ;;  %s345_s5 = sshll.u32 %s534_s4, 4  ;;  %s347_s23 = sshll.u32 %s611_s6, 4  ;;  %s346_s5 = int_to_ptr.vmem [resolvable:$true] %s345_s5  ;;  %s348_s23 = int_to_ptr.hbm [resolvable:$true] %s347_s23 }
  0x1e   :  { %150 = vst [vmem:[#allocation1 + $0x22] ss:$4 sm:$0xff] %v92_v15 }
  0x1f   :  { %152 = vst [vmem:[#allocation1 + $0x23] ss:$4 sm:$0xff] %v93_v16 }
  0x22   :  { %v153_v17 = vld.sshfl [vmem:[#allocation1] sm:$0xff pattern:$0x73625140] }
  0x23   :  { %360 = vmatmul.msk.f32.vlgmr.msra.gmra.mxu1 %vm102_vm0, %v153_v17 }
  0x26   :  { %v154_v18 = vld.sshfl [vmem:[#allocation1 + $0x20] sm:$0xff pattern:$0x73625140] }
  0x27   :  { %361 = vmatmul.msk.f32.vlgmr.msra.gmra.mxu2 %vm102_vm0, %v154_v18 }
  0x99   :  { %v123_v20 = vpop.f32.mrf.mxu0 }
  0x9a   :  { %v124_v21 = vadd.f32 %v376_v19, %v123_v20 }
  0xa0   :  { %v176_v22 = vpop.f32.mrf.mxu1 }
  0xa1   :  { %v184_v23 = vrot.slane %v176_v22, 2  ;;  %v185_v24 = vrot.slane %v176_v22, 4  ;;  %v196_v25 = vadd.f32 %v176_v22, %v124_v21  ;;  %v186_v26 = vrot.slane %v176_v22, 6 }
  0xa3   :  { %v197_v27 = vadd.f32 %v184_v23, %v124_v21  ;;  %v198_v28 = vadd.f32 %v185_v24, %v124_v21  ;;  %378 = vtanh.f32 %v196_v25  ;;  %v199_v29 = vadd.f32 %v186_v26, %v124_v21 }
  0xa5   :  { %380 = vtanh.f32 %v198_v28 }
  0xa6   :  { %382 = vtanh.f32 %v197_v27 }
  0xa7   :  { %384 = vtanh.f32 %v199_v29 }
  0xa9   :  { %v379_v31 = vpop.eup %378 }
  0xaa   :  { %v179_v32 = vpop.f32.mrf.mxu2  ;;  %v216_v33 = vmul.f32 %v379_v31, %v377_v30 }
  0xab   :  { %v187_v34 = vrot.slane %v179_v32, 2  ;;  %v188_v35 = vrot.slane %v179_v32, 4  ;;  %v189_v36 = vrot.slane %v179_v32, 6  ;;  %v200_v37 = vadd.f32 %v179_v32, %v124_v21  ;;  %v381_v38 = vpop.eup %380 }
  0xac   :  { %v225_v39 = vsel %vm224_vm1, %v216_v33, 0.0  ;;  %v383_v40 = vpop.eup %382  ;;  %v218_v43 = vmul.f32 %v381_v38, %v377_v30 }
  0xad   :  { %v201_v41 = vadd.f32 %v187_v34, %v124_v21  ;;  %v202_v42 = vadd.f32 %v188_v35, %v124_v21  ;;  %386 = vtanh.f32 %v200_v37  ;;  %226 = vadd.xlane.f32.xlu0 %v225_v39  ;;  %v203_v44 = vadd.f32 %v189_v36, %v124_v21  ;;  %v385_v45 = vpop.eup %384 }
  0xae   :  { %v231_v46 = vsel %vm224_vm1, %v218_v43, 0.0  ;;  %v217_v47 = vmul.f32 %v383_v40, %v377_v30  ;;  %v219_v51 = vmul.f32 %v385_v45, %v377_v30 }
  0xaf   :  { %388 = vtanh.f32 %v202_v42  ;;  %232 = vadd.xlane.f32.xlu1 %v231_v46 }
  0xb0   :  { %390 = vtanh.f32 %v201_v41  ;;  %v228_v50 = vsel %vm224_vm1, %v217_v47, 0.0  ;;  %v234_v55 = vsel %vm224_vm1, %v219_v51, 0.0 }
  0xb1   :  { %392 = vtanh.f32 %v203_v44 }
  0xb3   :  { %v387_v48 = vpop.eup %386 }
  0xb4   :  { %v220_v49 = vmul.f32 %v387_v48, %v377_v30 }
  0xb5   :  { %229 = vadd.xlane.f32.xlu0 %v228_v50  ;;  %v389_v52 = vpop.eup %388 }
  0xb6   :  { %v237_v53 = vsel %vm224_vm1, %v220_v49, 0.0  ;;  %v391_v54 = vpop.eup %390  ;;  %v222_v56 = vmul.f32 %v389_v52, %v377_v30 }
  0xb7   :  { %238 = vadd.xlane.f32.xlu2 %v237_v53  ;;  %v393_v57 = vpop.eup %392  ;;  %235 = vadd.xlane.f32.xlu1 %v234_v55  ;;  %v221_v58 = vmul.f32 %v391_v54, %v377_v30 }
  0xb8   :  { %v243_v59 = vsel %vm224_vm1, %v222_v56, 0.0  ;;  %v223_v60 = vmul.f32 %v393_v57, %v377_v30 }
  0xb9   :  { %v240_v61 = vsel %vm224_vm1, %v221_v58, 0.0 }
  0xba   :  { %v246_v62 = vsel %vm224_vm1, %v223_v60, 0.0 }
  0xbd   :  { %244 = vadd.xlane.f32.xlu0 %v243_v59 }
  0xbf   :  { %241 = vadd.xlane.f32.xlu2 %v240_v61  ;;  %247 = vadd.xlane.f32.xlu1 %v246_v62 }
 0x120   :  { %v227_v63 = vpop.xlane.xlu0 %226 }
 0x121   :  { %v259_v4 = vperm.slane %v227_v63, %v258_v2 }
 0x122   :  { %v233_v1 = vpop.xlane.xlu1 %232 }
 0x123   :  { %v261_v6 = vperm.slane %v233_v1, %v258_v2 }
 0x128   :  { %v230_v3 = vpop.xlane.xlu0 %229 }
 0x129   :  { %v260_v5 = vperm.slane %v230_v3, %v258_v2 }
 0x12a   :  { %v239_v7 = vpop.xlane.xlu2 %238  ;;  %v236_v9 = vpop.xlane.xlu1 %235 }
 0x12b   :  { %v268_v8 = vsel %vm267_vm2, %v260_v5, %v259_v4  ;;  %v262_v11 = vperm.slane %v236_v9, %v258_v2  ;;  %v263_v13 = vperm.slane %v239_v7, %v258_v2 }
 0x12c   :  { %v270_v10 = vsel %vm269_vm3, %v261_v6, %v268_v8 }
 0x12d   :  { %v272_v12 = vsel %vm271_vm4, %v262_v11, %v270_v10 }
 0x12e   :  { %v274_v17 = vsel %vm273_vm5, %v263_v13, %v272_v12 }
 0x130   :  { %v245_v14 = vpop.xlane.xlu0 %244 }
 0x131   :  { %v265_v16 = vperm.slane %v245_v14, %v258_v2 }
 0x132   :  { %v242_v15 = vpop.xlane.xlu2 %241  ;;  %v248_v19 = vpop.xlane.xlu1 %247 }
 0x133   :  { %v264_v18 = vperm.slane %v242_v15, %v258_v2  ;;  %v266_v20 = vperm.slane %v248_v19, %v258_v2 }
 0x135   :  { %v276_v21 = vsel %vm275_vm6, %v264_v18, %v274_v17 }
 0x136   :  { %v278_v22 = vsel %vm277_vm7, %v265_v16, %v276_v21 }
 0x137   :  { %v280_v23 = vsel %vm279_vm8, %v266_v20, %v278_v22 }
 0x138   :  { %282 = vxpose.xlu2.b32.start.end [1/1] (short) (narrow) %v280_v23, 8 }
 0x1d1   :  { %v298_v24 = vpop.trf.xlu2 }
 0x1d2   :  { %v315_v25 = vsel %vm314_vm9, %v298_v24, -inf }
 0x1d3   :  { %316 = vmax.xlane.f32.xlu0 %v315_v25 }
 0x246   :  { %v317_v26 = vpop.xlane.xlu0 %316 }
 0x247   :  { %v318_v27 = vsub.f32 %v298_v24, %v317_v26 }
 0x249   :  { %v319_v28 = vmul.f32 1.442695, %v318_v27 }
 0x24b   :  { %394 = vpow2.f32 %v319_v28 }
 0x251   :  { %v395_v29 = vpop.eup %394 }
 0x252   :  { %v321_v30 = vsel %vm314_vm9, %v395_v29, 0.0 }
 0x253   :  { %322 = vadd.xlane.f32.xlu1 %v321_v30 }
 0x2c6   :  { %v323_v31 = vpop.xlane.xlu1 %322 }
 0x2c7   :  { %396 = vrcp.f32 %v323_v31  ;;  %v335_v35 = vand.u32 2147483648, %v323_v31  ;;  %v333_v37 = vand.u32 2147483647, %v323_v31  ;;  %vm329_vm11 = vweird.f32 %v323_v31 }
 0x2c9   :  { %v336_v39 = vor.u32 1.1754944e-38, %v335_v35  ;;  %vm334_vm13 = vcmp.eq.f32.partialorder %v333_v37, 8.507059e+37 }
 0x2cd   :  { %v397_v32 = vpop.eup %396 }
 0x2ce   :  { %v325_v33 = vmul.f32 %v397_v32, %v323_v31  ;;  %vm330_vm10 = vweird.f32 %v397_v32 }
 0x2cf   :  { %vm331_vm12 = vmor %vm329_vm11, %vm330_vm10 }
 0x2d0   :  { %v326_v34 = vsub.f32 1.0, %v325_v33 }
 0x2d2   :  { %v327_v36 = vmul.f32 %v397_v32, %v326_v34 }
 0x2d4   :  { %v328_v38 = vadd.f32 %v397_v32, %v327_v36 }
 0x2d6   :  { %v332_v40 = vsel %vm331_vm12, %v397_v32, %v328_v38 }
 0x2d7   :  { %v337_v41 = vsel %vm334_vm13, %v336_v39, %v332_v40 }
 0x2d8   :  { %v338_v42 = vmul.f32 %v395_v29, %v337_v41 }
 0x2da   :  { %339 = vst.msk [vmem:[#allocation10] sm:$0x3] %vm314_vm9, %v338_v42 }
 0x2db   :  { %350 = dma.vmem_to_hbm [thread:$0]  %s346_s5, 32, %s348_s23, [#allocation4]  }
 0x2dc   :  { %524 = dma.done.wait [#allocation4], 32  }
 0x2dd   :  { %525 = vsyncadd [#allocation4], 4294967264 }
 0x2de   :  { %355 = vsyncpa [#allocation3], 1 }
 0x2df   :  { %356 = vsyncpa [#allocation6], 1 }
 0x2e0   :  { %357 = vsyncpa [#allocation9], 1 }
 0x2e1   :  { %358 = vsyncpa [#allocation4], 1 }

</bundles_post_ra>
